<compile_context>
chip_gen: v6e
topology: v6e:2x2x1
jax: 0.10.0
libtpu: 0.0.40
codegen_flags: <defaults>
</compile_context>

<pallas_src>
import functools

import numpy as np

import jax
import jax.numpy as jnp
from jax.experimental import pallas as pl
from jax.experimental.pallas import tpu as pltpu


# Conservative across v5e (16 MiB scoped default) / v6e / v7x (64 MiB physical).
_VMEM_LIMIT = 32 * 1024 * 1024


# ---------------------------------------------------------------------------
# Tap geometry (static): flat-index shifts + out-of-bounds masks per kernel tap
# ---------------------------------------------------------------------------

def _tap_geometry(H, W, kernel_size, dilation, padding):
    kh, kw = kernel_size
    dh, dw = dilation
    ph, pw = padding
    ys, xs = np.meshgrid(np.arange(H), np.arange(W), indexing="ij")
    ys = ys.reshape(-1)
    xs = xs.reshape(-1)
    shifts = []
    masks = []
    for ih in range(kh):
        for iw in range(kw):
            dy = ih * dh - ph
            dx = iw * dw - pw
            shifts.append(dy * W + dx)
            m = (ys + dy >= 0) & (ys + dy < H) & (xs + dx >= 0) & (xs + dx < W)
            masks.append(m.astype(np.float32))
    return shifts, np.stack(masks, axis=0)          # (KK,), (KK, H*W)


# ---------------------------------------------------------------------------
# Kernel 1: fused initial_mapping + reduce_mapping 1x1 convs + BN partial moments
# ---------------------------------------------------------------------------

def _stem_kernel(x_ref, w_ref, xmap_ref, red_ref, s1_ref, s2_ref, *, c_out):
    # x_ref: (1, C_in, HW)   w_ref: (C_out + C_red, C_in)
    # xmap_ref: (1, C_out, HW)  red_ref: (1, C_red, HW)  s1/s2: (1, C_red, 1)
    x = x_ref[0, :, :].astype(jnp.float32)
    y = jnp.dot(w_ref[...].astype(jnp.float32), x,
                preferred_element_type=jnp.float32)            # (C_out + C_red, HW)
    xm = y[:c_out, :]
    rd = y[c_out:, :]
    xmap_ref[0, :, :] = xm.astype(xmap_ref.dtype)
    red_ref[0, :, :] = rd.astype(red_ref.dtype)
    # Per-batch BN partial moments in f32 (finalized by a tiny JAX epilogue).
    s1_ref[0, :, :] = jnp.sum(rd, axis=1, keepdims=True)
    s2_ref[0, :, :] = jnp.sum(rd * rd, axis=1, keepdims=True)


def stem(x, w_init, w_red):
    B, C_in, H, W = x.shape
    HW = H * W
    C_out = w_init.shape[0]
    C_red = w_red.shape[0]
    x2 = x.reshape(B, C_in, HW)
    w_stacked = jnp.concatenate([w_init, w_red], axis=0)       # (C_out + C_red, C_in)
    kernel = functools.partial(_stem_kernel, c_out=C_out)
    return pl.pallas_call(
        kernel,
        out_shape=(
            jax.ShapeDtypeStruct((B, C_out, HW), x.dtype),
            jax.ShapeDtypeStruct((B, C_red, HW), x.dtype),
            jax.ShapeDtypeStruct((B, C_red, 1), jnp.float32),
            jax.ShapeDtypeStruct((B, C_red, 1), jnp.float32),
        ),
        grid_spec=pltpu.PrefetchScalarGridSpec(
            num_scalar_prefetch=0,
            grid=(B,),
            in_specs=[
                pl.BlockSpec((1, C_in, HW), lambda b: (b, 0, 0)),
                pl.BlockSpec((C_out + C_red, C_in), lambda b: (0, 0)),
            ],
            out_specs=[
                pl.BlockSpec((1, C_out, HW), lambda b: (b, 0, 0)),
                pl.BlockSpec((1, C_red, HW), lambda b: (b, 0, 0)),
                pl.BlockSpec((1, C_red, 1), lambda b: (b, 0, 0)),
                pl.BlockSpec((1, C_red, 1), lambda b: (b, 0, 0)),
            ],
        ),
        compiler_params=pltpu.CompilerParams(
            dimension_semantics=("parallel",),
            vmem_limit_bytes=_VMEM_LIMIT,
        ),
    )(x2, w_stacked)


# ---------------------------------------------------------------------------
# Kernel 2: fused sigma-mapping + span conv + unfold*kernel aggregation (hot path)
# ---------------------------------------------------------------------------

def _involution_kernel(xmap_ref, red_ref, scale_ref, shift_ref, wspan_ref, mask_ref,
                       o_ref, km_ref, *, kk, c_per_g, hw, pad, shifts):
    # xmap_ref: (1, 1, cg, HW) -- this (batch, group) slice of x_mapped
    # red_ref:  (1, C_red, HW)   scale/shift: (C_red, 1)
    # wspan_ref: (1, KK, C_red)  mask_ref: (KK, HW)   o_ref: (1, 1, cg, HW)
    # km_ref: VMEM scratch (KK, HW) f32

    # Kernel-generation branch: BN-normalize + ReLU + span 1x1 conv.  The
    # out-of-bounds tap mask is folded into the kernel map here so the aggregation
    # loop below needs no masking at all.
    a = jnp.maximum(
        red_ref[0, :, :].astype(jnp.float32) * scale_ref[...] + shift_ref[...], 0.0)
    km_ref[...] = (
        jnp.dot(wspan_ref[0, :, :].astype(jnp.float32), a,
                preferred_element_type=jnp.float32) * mask_ref[...])

    # Lane-dense, zero-padded flat view of this group's x_mapped slice, built
    # in-register (128-lane-aligned pad blocks; x_pad never materialized in HBM).
    xm = xmap_ref[0, 0, :, :].astype(jnp.float32)               # (cg, HW)
    if pad > 0:
        zpad = jnp.zeros((c_per_g, pad), jnp.float32)
        xpv = jnp.concatenate([zpad, xm, zpad], axis=1)         # (cg, pad+HW+pad)
    else:
        xpv = xm

    # Fused unfold * kernel summed over taps: each tap is a static lane-shifted slice
    # (XLU) feeding a VPU FMA; one lane-dense store per grid step.
    # TODO(synk): at realistic C/HW sizes, add an H-row tile axis to the grid (with a
    # (kh-1)*dh row halo) and accumulate in a VMEM scratch instead of fully unrolling.
    acc = jnp.zeros((c_per_g, hw), jnp.float32)
    for k in range(kk):
        start = pad + shifts[k]
        acc = acc + km_ref[pl.ds(k, 1), :] * xpv[:, start:start + hw]
    o_ref[0, 0, :, :] = acc.astype(o_ref.dtype)


def involution_aggregate(x_mapped, reduced, scale, shift, w_span, *, groups,
                         kernel_size, dilation, padding, H, W):
    B, C_out, HW = x_mapped.shape
    C_red = reduced.shape[1]
    kh, kw = kernel_size
    kk = kh * kw
    cg = C_out // groups

    shifts, mask_np = _tap_geometry(H, W, kernel_size, dilation, padding)
    max_abs = max((abs(s) for s in shifts), default=0)
    pad = 0 if max_abs == 0 else ((max_abs + 127) // 128) * 128   # lane-aligned pad

    xmap4 = x_mapped.reshape(B, groups, cg, HW)
    wspan3 = w_span.reshape(groups, kk, C_red)
    mask = jnp.asarray(mask_np)                                   # (KK, HW) f32
    scale2 = scale.reshape(C_red, 1).astype(jnp.float32)
    shift2 = shift.reshape(C_red, 1).astype(jnp.float32)

    kernel = functools.partial(
        _involution_kernel, kk=kk, c_per_g=cg, hw=HW, pad=pad, shifts=tuple(shifts))

    out4 = pl.pallas_call(
        kernel,
        out_shape=jax.ShapeDtypeStruct((B, groups, cg, HW), x_mapped.dtype),
        grid_spec=pltpu.PrefetchScalarGridSpec(
            num_scalar_prefetch=0,
            grid=(B, groups),
            in_specs=[
                pl.BlockSpec((1, 1, cg, HW), lambda b, g: (b, g, 0, 0)),
                pl.BlockSpec((1, C_red, HW), lambda b, g: (b, 0, 0)),
                pl.BlockSpec((C_red, 1), lambda b, g: (0, 0)),
                pl.BlockSpec((C_red, 1), lambda b, g: (0, 0)),
                pl.BlockSpec((1, kk, C_red), lambda b, g: (g, 0, 0)),
                pl.BlockSpec((kk, HW), lambda b, g: (0, 0)),
            ],
            out_specs=pl.BlockSpec((1, 1, cg, HW), lambda b, g: (b, g, 0, 0)),
            scratch_shapes=[pltpu.VMEM((kk, HW), jnp.float32)],
        ),
        compiler_params=pltpu.CompilerParams(
            dimension_semantics=("parallel", "parallel"),
            vmem_limit_bytes=_VMEM_LIMIT,
        ),
    )(xmap4, reduced, scale2, shift2, wspan3, mask)
    return out4.reshape(B, C_out, H, W)


# ---------------------------------------------------------------------------
# Involution2d forward (glue + Pallas kernels)
# ---------------------------------------------------------------------------

def involution2d_forward(x, params, *, kernel_size=(7, 7), stride=(1, 1),
                         groups=1, reduce_ratio=1, dilation=(1, 1),
                         padding=(3, 3), eps=1e-5):
    B, C_in, H, W = x.shape
    kh, kw = kernel_size
    dh, dw = dilation
    ph, pw = padding
    # TODO(synk): AvgPool2d o_mapping only supported for stride=(1,1) (identity); the
    # torch forward's .view also requires a "same"-size unfold output.
    assert stride == (1, 1)
    assert 2 * ph == dh * (kh - 1) and 2 * pw == dw * (kw - 1), (
        "padding/dilation/kernel must give a same-size unfold output")

    w_init = params["w_init"]          # (C_out, C_in) or None (identity mapping)
    w_red = params["w_red"]            # (C_red, C_in)
    w_span = params["w_span"]          # (G * Kh * Kw, C_red)
    gamma = params["gamma"]            # (C_red,)
    beta = params["beta"]              # (C_red,)

    if w_init is None:
        # initial_mapping is nn.Identity() when C_in == C_out; an identity 1x1 weight
        # keeps the fused stem path and reproduces x exactly.
        w_init = jnp.eye(C_in, dtype=x.dtype)

    # Fused 1x1 convs + in-kernel per-batch BN partial moments (x read from HBM once).
    x_mapped, reduced, s1, s2 = stem(x, w_init, w_red)

    # BatchNorm2d (training-mode, biased variance) scale/shift from in-kernel moments.
    n = float(B * H * W)
    mean = jnp.sum(s1[:, :, 0], axis=0) / n
    ex2 = jnp.sum(s2[:, :, 0], axis=0) / n
    var = jnp.maximum(ex2 - mean * mean, 0.0)
    scale = gamma / jnp.sqrt(var + eps)
    shift = beta - mean * scale

    # Fused sigma-mapping + span conv + unfold*kernel aggregation (lane-dense).
    return involution_aggregate(
        x_mapped, reduced, scale, shift, w_span, groups=groups,
        kernel_size=kernel_size, dilation=dilation, padding=padding, H=H, W=W)


# ---------------------------------------------------------------------------
# Pure-JAX reference (for correctness check)
# ---------------------------------------------------------------------------

def reference_forward(x, params, *, kernel_size, groups, dilation, padding, eps=1e-5):
    B, C_in, H, W = x.shape
    w_init, w_red, w_span = params["w_init"], params["w_red"], params["w_span"]
    gamma, beta = params["gamma"], params["beta"]

    xm = jnp.einsum('oc,bchw->bohw', w_init, x) if w_init is not None else x
    C_out = xm.shape[1]

    red = jnp.einsum('rc,bchw->brhw', w_red, x)
    mean = red.mean(axis=(0, 2, 3), keepdims=True)
    var = red.var(axis=(0, 2, 3), keepdims=True)
    sig = jnp.maximum(
        (red - mean) / jnp.sqrt(var + eps) * gamma[None, :, None, None]
        + beta[None, :, None, None], 0.0)
    kmap = jnp.einsum('kr,brhw->bkhw', w_span, sig)

    Kh, Kw = kernel_size
    dh, dw = dilation
    ph, pw = padding
    xpad = jnp.pad(xm, ((0, 0), (0, 0), (ph, ph), (pw, pw)))
    kmap = kmap.reshape(B, groups, Kh * Kw, H, W)
    cg = C_out // groups

    pieces = []
    for g in range(groups):
        acc = jnp.zeros((B, cg, H, W), jnp.float32)
        for ih in range(Kh):
            for iw in range(Kw):
                k = ih * Kw + iw
                patch = xpad[:, g * cg:(g + 1) * cg,
                             ih * dh: ih * dh + H, iw * dw: iw * dw + W]
                acc = acc + kmap[:, g, k][:, None] * patch
        pieces.append(acc)
    return jnp.concatenate(pieces, axis=1).astype(x.dtype)


# ---------------------------------------------------------------------------
# Main
# ---------------------------------------------------------------------------

if __name__ == "__main__":
    # Module config (matches Involution2d(4, 8, groups=2, reduce_ratio=2))
    B, C_in, H, W = 2, 4, 16, 16
    C_out = 8
    groups = 2
    reduce_ratio = 2
    kernel_size = (7, 7)
    stride = (1, 1)
    dilation = (1, 1)
    padding = (3, 3)
    C_red = C_out // reduce_ratio
    KK = kernel_size[0] * kernel_size[1]

    key = jax.random.PRNGKey(0)
    k_x, k_init, k_red, k_span = jax.random.split(key, 4)

    x = jax.random.normal(k_x, (B, C_in, H, W), jnp.float32)
    params = {
        # initial_mapping (Conv2d 1x1, bias=False) since C_in != C_out
        "w_init": jax.random.normal(k_init, (C_out, C_in), jnp.float32) * 0.1,
        # reduce_mapping (Conv2d 1x1, bias=False)
        "w_red": jax.random.normal(k_red, (C_red, C_in), jnp.float32) * 0.1,
        # span_mapping (Conv2d 1x1, bias=False)
        "w_span": jax.random.normal(k_span, (groups * KK, C_red), jnp.float32) * 0.1,
        # BatchNorm2d affine params (PyTorch defaults)
        "gamma": jnp.ones((C_red,), jnp.float32),
        "beta": jnp.zeros((C_red,), jnp.float32),
    }

    out = involution2d_forward(
        x, params, kernel_size=kernel_size, stride=stride, groups=groups,
        reduce_ratio=reduce_ratio, dilation=dilation, padding=padding)
    out = jax.block_until_ready(out)

    ref = reference_forward(
        x, params, kernel_size=kernel_size, groups=groups,
        dilation=dilation, padding=padding)
    ref = jax.block_until_ready(ref)

    assert out.shape == (B, C_out, H, W), out.shape
    assert jnp.allclose(out, ref, rtol=5e-3, atol=5e-3), (
        float(jnp.max(jnp.abs(out - ref))))

    print("KERNEL_OK")
</pallas_src>

<mosaic_0001>
module attributes {stable_mosaic.version = 11 : i64} {
  func.func @_stem_kernel(%arg0: i32, %arg1: memref<1x4x256xf32, #tpu.memory_space<vmem>>, %arg2: memref<12x4xf32, #tpu.memory_space<vmem>>, %arg3: memref<1x8x256xf32, #tpu.memory_space<vmem>>, %arg4: memref<1x4x256xf32, #tpu.memory_space<vmem>>, %arg5: memref<1x4x1xf32, #tpu.memory_space<vmem>>, %arg6: memref<1x4x1xf32, #tpu.memory_space<vmem>>) attributes {dimension_semantics = [#tpu.dimension_semantics<parallel>], iteration_bounds = array<i64: 2>, scalar_prefetch = 0 : i64, scratch_operands = 0 : i64, tpu.core_type = #tpu.core_type<tc>, window_params = [{transform_indices = @transform_0, window_bounds = array<i64: 1, 4, 256>}, {pipeline_mode = #tpu.pipeline_mode<synchronous>, transform_indices = @transform_1, window_bounds = array<i64: 12, 4>}, {transform_indices = @transform_2, window_bounds = array<i64: 1, 8, 256>}, {transform_indices = @transform_3, window_bounds = array<i64: 1, 4, 256>}, {transform_indices = @transform_4, window_bounds = array<i64: 1, 4, 1>}, {transform_indices = @transform_5, window_bounds = array<i64: 1, 4, 1>}]} {
    %c0 = arith.constant 0 : index
    %c0_0 = arith.constant 0 : index
    %c0_1 = arith.constant 0 : index
    %0 = vector.load %arg1[%c0, %c0_0, %c0_1] : memref<1x4x256xf32, #tpu.memory_space<vmem>>, vector<1x4x256xf32>
    %1 = vector.shape_cast %0 : vector<1x4x256xf32> to vector<4x256xf32>
    %c0_2 = arith.constant 0 : index
    %c0_3 = arith.constant 0 : index
    %2 = vector.load %arg2[%c0_2, %c0_3] : memref<12x4xf32, #tpu.memory_space<vmem>>, vector<12x4xf32>
    %cst = arith.constant dense<0.000000e+00> : vector<12x256xf32>
    %3 = tpu.matmul %2, %1, %cst {dimension_numbers = #tpu.dot_dimension_numbers<[1], [0], [0], [1], [0, 0, 1, 1], [], []>} : vector<12x4xf32>, vector<4x256xf32>, vector<12x256xf32> -> vector<12x256xf32>
    %4 = vector.extract_strided_slice %3 {offsets = [0, 0], sizes = [8, 256], strides = [1, 1]} : vector<12x256xf32> to vector<8x256xf32>
    %5 = vector.extract_strided_slice %3 {offsets = [8, 0], sizes = [4, 256], strides = [1, 1]} : vector<12x256xf32> to vector<4x256xf32>
    %c0_4 = arith.constant 0 : index
    %c0_5 = arith.constant 0 : index
    %c0_6 = arith.constant 0 : index
    %6 = vector.load %arg3[%c0_4, %c0_5, %c0_6] : memref<1x8x256xf32, #tpu.memory_space<vmem>>, vector<1x8x256xf32>
    %7 = vector.shape_cast %6 : vector<1x8x256xf32> to vector<8x256xf32>
    %8 = vector.shape_cast %4 : vector<8x256xf32> to vector<1x8x256xf32>
    tpu.vector_store %arg3[%c0_4, %c0_5, %c0_6], %8 {strides = array<i32>} : memref<1x8x256xf32, #tpu.memory_space<vmem>>, vector<1x8x256xf32>,
    %c0_7 = arith.constant 0 : index
    %c0_8 = arith.constant 0 : index
    %c0_9 = arith.constant 0 : index
    %9 = vector.load %arg4[%c0_7, %c0_8, %c0_9] : memref<1x4x256xf32, #tpu.memory_space<vmem>>, vector<1x4x256xf32>
    %10 = vector.shape_cast %9 : vector<1x4x256xf32> to vector<4x256xf32>
    %11 = vector.shape_cast %5 : vector<4x256xf32> to vector<1x4x256xf32>
    tpu.vector_store %arg4[%c0_7, %c0_8, %c0_9], %11 {strides = array<i32>} : memref<1x4x256xf32, #tpu.memory_space<vmem>>, vector<1x4x256xf32>,
    %cst_10 = arith.constant dense<0.000000e+00> : vector<4xf32>
    %12 = vector.multi_reduction <add>, %5, %cst_10 [1] : vector<4x256xf32> to vector<4xf32>
    %13 = vector.shape_cast %12 : vector<4xf32> to vector<4x1xf32>
    %c0_11 = arith.constant 0 : index
    %c0_12 = arith.constant 0 : index
    %c0_13 = arith.constant 0 : index
    %14 = vector.load %arg5[%c0_11, %c0_12, %c0_13] : memref<1x4x1xf32, #tpu.memory_space<vmem>>, vector<1x4x1xf32>
    %15 = vector.shape_cast %14 : vector<1x4x1xf32> to vector<4x1xf32>
    %16 = vector.shape_cast %13 : vector<4x1xf32> to vector<1x4x1xf32>
    tpu.vector_store %arg5[%c0_11, %c0_12, %c0_13], %16 {strides = array<i32>} : memref<1x4x1xf32, #tpu.memory_space<vmem>>, vector<1x4x1xf32>,
    %17 = arith.mulf %5, %5 : vector<4x256xf32>
    %cst_14 = arith.constant dense<0.000000e+00> : vector<4xf32>
    %18 = vector.multi_reduction <add>, %17, %cst_14 [1] : vector<4x256xf32> to vector<4xf32>
    %19 = vector.shape_cast %18 : vector<4xf32> to vector<4x1xf32>
    %c0_15 = arith.constant 0 : index
    %c0_16 = arith.constant 0 : index
    %c0_17 = arith.constant 0 : index
    %20 = vector.load %arg6[%c0_15, %c0_16, %c0_17] : memref<1x4x1xf32, #tpu.memory_space<vmem>>, vector<1x4x1xf32>
    %21 = vector.shape_cast %20 : vector<1x4x1xf32> to vector<4x1xf32>
    %22 = vector.shape_cast %19 : vector<4x1xf32> to vector<1x4x1xf32>
    tpu.vector_store %arg6[%c0_15, %c0_16, %c0_17], %22 {strides = array<i32>} : memref<1x4x1xf32, #tpu.memory_space<vmem>>, vector<1x4x1xf32>,
    return
  }
  func.func @transform_0(%arg0: i32) -> (i32, i32, i32) {
    %c0_i32 = arith.constant 0 : i32
    %c0_i32_0 = arith.constant 0 : i32
    %c0_i32_1 = arith.constant 0 : i32
    return %arg0, %c0_i32, %c0_i32_0 : i32, i32, i32
  }
  func.func @transform_1(%arg0: i32) -> (i32, i32) {
    %c0_i32 = arith.constant 0 : i32
    %c0_i32_0 = arith.constant 0 : i32
    %c0_i32_1 = arith.constant 0 : i32
    return %c0_i32, %c0_i32_0 : i32, i32
  }
  func.func @transform_2(%arg0: i32) -> (i32, i32, i32) {
    %c0_i32 = arith.constant 0 : i32
    %c0_i32_0 = arith.constant 0 : i32
    %c0_i32_1 = arith.constant 0 : i32
    return %arg0, %c0_i32, %c0_i32_0 : i32, i32, i32
  }
  func.func @transform_3(%arg0: i32) -> (i32, i32, i32) {
    %c0_i32 = arith.constant 0 : i32
    %c0_i32_0 = arith.constant 0 : i32
    %c0_i32_1 = arith.constant 0 : i32
    return %arg0, %c0_i32, %c0_i32_0 : i32, i32, i32
  }
  func.func @transform_4(%arg0: i32) -> (i32, i32, i32) {
    %c0_i32 = arith.constant 0 : i32
    %c0_i32_0 = arith.constant 0 : i32
    %c0_i32_1 = arith.constant 0 : i32
    return %arg0, %c0_i32, %c0_i32_0 : i32, i32, i32
  }
  func.func @transform_5(%arg0: i32) -> (i32, i32, i32) {
    %c0_i32 = arith.constant 0 : i32
    %c0_i32_0 = arith.constant 0 : i32
    %c0_i32_1 = arith.constant 0 : i32
    return %arg0, %c0_i32, %c0_i32_0 : i32, i32, i32
  }
}

</mosaic_0001>

<bundles_post_ra>
// kernel: tpu_custom_call.1
= control target key start
LH: loop header
LB: loop body
LE: loop exit
PB: predicated region body
PF: predicated region fallthrough
CT: control target
= control target key end

     0   :  { %11 = vsyncpa [#allocation3], 0  ;;  %s898_s0 = inlined_call_operand.vmem [shape: f32[2,4,256], index: 0, kind: input, shape index: {}]   ;;  %s899_s1 = inlined_call_operand.vmem [shape: f32[12,4], index: 1, kind: input, shape index: {}]   ;;  %s900_s2 = inlined_call_operand.hbm [shape: f32[2,8,256], index: 2, kind: output, shape index: {0}]   ;;  %s901_s3 = inlined_call_operand.hbm [shape: f32[2,4,256], index: 3, kind: output, shape index: {1}]   ;;  %s902_s4 = inlined_call_operand.vmem [shape: f32[2,4,1], index: 4, kind: output, shape index: {2}]   ;;  %s903_s5 = inlined_call_operand.vmem [shape: f32[2,4,1], index: 5, kind: output, shape index: {3}]  }
   0x1   :  { %13 = vsyncpa [#allocation3 + $0x1], 0 }
   0x2   :  { %14 = vsyncpa [#allocation5], 0 }
   0x3   :  { %16 = vsyncpa [#allocation5 + $0x1], 0  ;;  %s755_s18 = smov 0   ;;  %s757_s19 = smov 0  }
   0x4   :  { %s759_s20 = smov 0   ;;  %s761_s21 = smov 0  }
   0x5 LB: > { %s776_s22 = sadd.s32 4294967295, %s720_s21   ;;  %s557_s23 = sadd.s32 4294967294, %s720_s21   ;;  %s720_s21 = sphi %s761_s21, %s909_s21   ;;  %s716_s20 = sphi %s759_s20, %s908_s20   ;;  %s712_s19 = sphi %s757_s19, %s907_s19   ;;  %s708_s18 = sphi %s755_s18, %s906_s18  }
   0x6   : > { %s780_s24 = sadd.s32 1, %s720_s21   ;;  %s76_s25 = sadd.s32 1, %s716_s20 }
   0x7   : > { %s73_s26 = ssub.s32 %s720_s21, %s780_s24  ;;  %p86_p0 = scmp.ne.s32.totalorder %s716_s20, %s712_s19 }
   0x8   : > { %p74_p1 = scmp.eq.s32.totalorder %s73_s26, 0  ;;  %p87_p2 = scmp.eq.s32.totalorder %s776_s22, 1 }
   0x9   : > { %p92_p3 = scmp.ne.s32.totalorder %s712_s19, %s708_s18  ;;  %p93_p4 = scmp.eq.s32.totalorder %s557_s23, 1 }
   0xa   : > { %s791_s27 = scalar_select %p74_p1, %s716_s20, %s76_s25  }
   0xb   : > { %p793_p5 = por %p87_p2, %p86_p0  ;;  %p797_p6 = por %p93_p4, %p92_p3 }
   0xc   : > { %p560_p7 = scmp.ge.s32.totalorder %s720_s21, 1  ;;  %p200_p8 = scmp.lt.s32.totalorder %s720_s21, 3 }
   0xe   : > { %p201_p9 = pnand %p560_p7, %p200_p8 }
   0xf   : > { %p241_p10 = scmp.lt.s32.totalorder (!%p201_p9), %s776_s22, 1  ;;  %s822_s14 = sand.u32 (!%p201_p9), 1, %s712_s19  }
  0x10   : > { %204 = sbr.rel (%p201_p9) target bundleno = 371 (0x173), region = 28  ;;  %s561_s15 = sshll.u32 (!%p201_p9), %s822_s14, 4 }
  0x11   : > { %s562_s16 = sshll.u32 (!%p201_p9), %s822_s14, 3  ;;  %s221_s17 = scalar_lea.vmem (!%p201_p9), [#allocation2], %s561_s15 }
  0x12   : > { %s829_s23 = scalar_lea.vmem (!%p201_p9), [#allocation4], %s562_s16  ;;  %s398_s25 = sshll.u32 (!%p201_p9), %s221_s17, 4  ;;  %s833_s25 = int_to_ptr.vmem [resolvable:$true] %s398_s25 }
  0x13   : > { %s580_s26 = sshll.u32 (!%p201_p9), %s776_s22, 8  ;;  %s371_s10 = scalar_lea.sflag (!%p201_p9), [#allocation3], %s822_s14 }
  0x14   : > { %s630_s11 = scalar_lea.vmem (!%p201_p9), %s833_s25, 256  ;;  %s723_s12 = smov (!%p201_p9), [#allocation2]  }
  0x15   : > { %v722_v0 = vmov 0.0   ;;  %s805_s30 = scalar_select %p241_p10, %s776_s22, 1  ;;  %vm266_vm0 = vcmask 1043456   ;;  %v256_v3 = vld [vmem:[%s899_s1 + $0x8] sm:$0xf]  ;;  %vm259_vm1 = vcmask 31744  }
  0x16   : > { %341 = vmatprep.mubr.f32.mxu1 %v722_v0  ;;  %335 = vmatprep.mubr.f32.mxu0 %v722_v0  ;;  %v255_v4 = vld [vmem:[%s899_s1] sm:$0xff]  ;;  %p631_p11 = scmp.ne.s32.totalorder %s833_s25, %s630_s11  ;;  %s634_s13 = sshll.u32 %s723_s12, 4  ;;  %s635_s13 = int_to_ptr.vmem [resolvable:$false] %s634_s13 }
  0x17   : > { %s579_s6 = sshll.u32 %s805_s30, 3  ;;  %s636_s15 = scalar_lea.vmem %s635_s13, 512 }
  0x18   : > { %s245_s9 = scalar_lea.vmem %s898_s0, %s579_s6  ;;  %s581_s6 = sshll.u32 %s776_s22, 7 }
  0x19   : > { %v254_v1 = vld [vmem:[%s245_s9] sm:$0xff]  ;;  %s396_s9 = scalar_lea.hbm %s900_s2, %s580_s26  ;;  %p632_p12 = pnand %p631_p11, %p793_p5 }
  0x1a   : > { %v258_v2 = vcombine.high %v254_v1, %v254_v1  ;;  %p637_p0 = scmp.lt.s32.totalorder %s833_s25, %s635_s13  ;;  %p638_p1 = scmp.lt.s32.totalorder %s636_s15, %s630_s11 }
  0x1b   : > { %p633_p13 = pneg %p632_p12 }
  0x1c   : > { %582 = vmatprep.subr.msk.mxu1 %vm266_vm0, %v258_v2  ;;  %567 = vmatprep.subr.msk.mxu0 %vm266_vm0, %v258_v2  ;;  %p639_p2 = por %p638_p1, %p637_p0 }
  0x1d   : > { %583 = vmatpush1.msk.msra.mxu1 %vm266_vm0, %v254_v1  ;;  %568 = vmatpush1.msk.msra.mxu0 %vm266_vm0, %v254_v1 }
  0x1e   : > { %570 = vmatmul.mubr.msk.f32.vlgmr.msra.gmra.mxu1 %vm259_vm1, %v256_v3  ;;  %569 = vmatmul.mubr.msk.f32.vlgmr.msra.gmra.mxu0 %vm259_vm1, %v255_v4  ;;  %p640_p3 = pnand %p639_p2, %p633_p13 }
  0xde   : > { %v343_v5 = vpop.f32.mrf.mxu1  ;;  %v337_v6 = vpop.f32.mrf.mxu0 }
  0xdf   : > { %348 = vst [vmem:[%s221_s17] sm:$0xff] %v337_v6  ;;  %v362_v7 = vmul.f32 %v343_v5, %v343_v5  ;;  %v355_v11 = vsel %vm266_vm0, %v343_v5, 0.0 }
  0xe0   : > { %v345_v8 = vpop.f32.mrf.mxu1  ;;  %v339_v17 = vpop.f32.mrf.mxu0 }
  0xe1   : > { %v352_v9 = vcombine.low %v343_v5, %v345_v8  ;;  %v363_v10 = vmul.f32 %v345_v8, %v345_v8  ;;  %v356_v12 = vsel %vm266_vm0, %v345_v8, 0.0  ;;  %v364_v15 = vsel %vm266_vm0, %v362_v7, 0.0  ;;  %349 = vst [vmem:[%s221_s17 + $0x8] sm:$0xff] %v339_v17 }
  0xe2   : > { %v357_v13 = vadd.f32 %v356_v12, %v355_v11 }
  0xe3   : > { %v365_v14 = vsel %vm266_vm0, %v363_v10, 0.0  ;;  %354 = vst [vmem:[%s829_s23] sm:$0xff] %v352_v9 }
  0xe4   : > { %358 = vadd.xlane.f32.xlu0 %v357_v13  ;;  %v366_v16 = vadd.f32 %v365_v14, %v364_v15 }
  0xe8   : > { %367 = vadd.xlane.f32.xlu0 %v366_v16 }
  0xe9   : > { %643 = shalt.err (!%p640_p3)
}
  0xea   : > { %s644_s22 = scalar_lea.hbm %s396_s9, 256  ;;  %s648_s26 = scalar_lea.hbm %s900_s2, 512 }
  0xeb   : > { %p645_p4 = scmp.ne.s32.totalorder %s396_s9, %s644_s22  ;;  %p649_p9 = scmp.lt.s32.totalorder %s396_s9, %s900_s2 }
  0xec   : > { %p650_p10 = scmp.lt.s32.totalorder %s648_s26, %s644_s22 }
  0xed   : > { %p646_p7 = pnand %p645_p4, %p793_p5 }
  0xee   : > { %p651_p11 = por %p650_p10, %p649_p9 }
  0xef   : > { %p647_p8 = pneg %p646_p7 }
  0xf1   : > { %p652_p12 = pnand %p651_p11, %p647_p8 }
  0xf3   : > { %655 = shalt.err (!%p652_p12)
}
  0xf4   : > { %584 = dma.vmem_to_hbm [thread:$0]  (%p793_p5), %s833_s25, 256, %s396_s9, %s371_s10  }
  0xf5   : > { %s410_s13 = scalar_lea.hbm %s901_s3, %s581_s6  ;;  %s412_s15 = sshll.u32 %s829_s23, 4  ;;  %s413_s15 = int_to_ptr.vmem [resolvable:$true] %s412_s15 }
  0xf6   : > { %s376_s16 = scalar_lea.sflag [#allocation5], %s822_s14  ;;  %s656_s17 = scalar_lea.vmem %s413_s15, 128 }
  0xf7   : > { %p657_p13 = scmp.ne.s32.totalorder %s413_s15, %s656_s17  ;;  %s724_s22 = smov [#allocation4]  }
  0xf8   : > { %s660_s26 = sshll.u32 %s724_s22, 4  ;;  %s661_s26 = int_to_ptr.vmem [resolvable:$false] %s660_s26 }
  0xf9   : > { %p658_p0 = pnand %p657_p13, %p793_p5  ;;  %s662_s7 = scalar_lea.vmem %s661_s26, 256 }
  0xfa   : > { %p663_p2 = scmp.lt.s32.totalorder %s413_s15, %s661_s26  ;;  %p664_p3 = scmp.lt.s32.totalorder %s662_s7, %s656_s17 }
  0xfb   : > { %p659_p1 = pneg %p658_p0 }
  0xfc   : > { %p665_p4 = por %p664_p3, %p663_p2 }
  0xfe   : > { %p666_p7 = pnand %p665_p4, %p659_p1 }
 0x100   : > { %669 = shalt.err (!%p666_p7)
}
 0x101   : > { %s670_s25 = scalar_lea.hbm %s410_s13, 128  ;;  %s674_s6 = scalar_lea.hbm %s901_s3, 256 }
 0x102   : > { %p671_p8 = scmp.ne.s32.totalorder %s410_s13, %s670_s25  ;;  %p675_p11 = scmp.lt.s32.totalorder %s410_s13, %s901_s3 }
 0x103   : > { %p676_p12 = scmp.lt.s32.totalorder %s674_s6, %s670_s25 }
 0x104   : > { %p672_p9 = pnand %p671_p8, %p793_p5 }
 0x105   : > { %p677_p13 = por %p676_p12, %p675_p11 }
 0x106   : > { %p673_p10 = pneg %p672_p9 }
 0x108   : > { %p678_p0 = pnand %p677_p13, %p673_p10 }
 0x10a   : > { %681 = shalt.err (!%p678_p0)
}
 0x10b   : > { %585 = dma.vmem_to_hbm [thread:$0]  (%p793_p5), %s413_s15, 128, %s410_s13, %s376_s16   ;;  %vm360_vm2 = vcmask 3072  }
 0x10c   : > { %s565_s8 = sshll.u32 %s805_s30, 2 }
 0x10d   : > { %s249_s17 = scalar_lea.vmem %s902_s4, %s565_s8  ;;  %s253_s7 = scalar_lea.vmem %s903_s5, %s565_s8 }
 0x16d   : > { %v359_v18 = vpop.xlane.xlu0 %358 }
 0x16e   : > { %361 = vst.msk [vmem:[%s249_s17] sm:$0xf] %vm360_vm2, %v359_v18 }
 0x171   : > { %v368_v19 = vpop.xlane.xlu0 %367 }
 0x172   : > { %369 = vst.msk [vmem:[%s253_s7] sm:$0xf] %vm360_vm2, %v368_v19 }
 0x173 PF: > { %p595_p1 = scmp.ge.s32.totalorder %s720_s21, 2  ;;  %s430_s28 = sand.u32 1, %s708_s18  }
 0x174   : > { %s431_s30 = scalar_lea.sflag [#allocation3], %s430_s28 }
 0x175   : > { %p589_p5 = pnand %p595_p1, %p797_p6 }
 0x177   : > { %p590_p2 = pneg %p589_p5 }
 0x179   : > { %699 = dma.done.wait (%p590_p2), %s431_s30, 256  }
 0x17a   : > { %701 = vsyncadd (%p590_p2), %s431_s30, 4294967040  ;;  %s440_s13 = scalar_lea.sflag [#allocation5], %s430_s28 }
 0x17b   : > { %703 = dma.done.wait (%p590_p2), %s440_s13, 128  }
 0x17c   : > { %705 = vsyncadd (%p590_p2), %s440_s13, 4294967168  ;;  %p19_p3 = scmp.ge.s32.totalorder %s780_s24, 4   ;;  %s906_s18 = smov %s712_s19 }
 0x17d   : > { %s907_s19 = smov %s716_s20  ;;  %s908_s20 = smov %s791_s27 }
 0x17e   : > { %s909_s21 = smov %s780_s24  ;;  %21 = sbr.rel (!%p19_p3) target bundleno = 5 (0x5), region = 104 }
 0x183   :  { %459 = vsyncpa [#allocation3], 1 }
 0x184   :  { %461 = vsyncpa [#allocation3 + $0x1], 1 }
 0x185   :  { %462 = vsyncpa [#allocation5], 1 }
 0x186   :  { %464 = vsyncpa [#allocation5 + $0x1], 1 }

</bundles_post_ra>
